<compile_context>
chip_gen: v7x
topology: tpu7x:2x2x1
jax: 0.10.0
libtpu: 0.0.40
codegen_flags: <defaults>
</compile_context>

<pallas_src>
import jax
import jax.numpy as jnp
from jax.experimental import pallas as pl
from jax.experimental.pallas import tpu as pltpu

EPS = 1e-5
MOMENTUM = 0.1

_TARGET_BLOCK_BYTES = 2 * 1024 * 1024   # ~2 MiB blocks: amortize per-step overhead, fit v5e
_FUSED_MAX_F32_BYTES = 4 * 1024 * 1024  # single-pass path only when f32(x) <= 4 MiB


# ----------------------------------------------------------------------------- tiling

def _largest_aligned_divisor(dim, align, cap):
    """Largest multiple of `align` that divides `dim` and is <= cap, or None."""
    t = (min(cap, dim) // align) * align
    while t >= align:
        if dim % t == 0:
            return t
        t -= align
    return None


def _pick_tiles(N, C, L, itemsize):
    """Pick (tn, tc, tl) so blocks are ~_TARGET_BLOCK_BYTES and layout-legal."""
    # channel (sublane) tile — sub-32-bit dtypes pack along sublanes
    c_align = {1: 32, 2: 16}.get(itemsize, 8)
    if C <= 256:
        tc = C
    else:
        tc = _largest_aligned_divisor(C, c_align, 256) or C
    # v7x megacore: give the parallel C grid axis >= 2 steps when it stays aligned;
    # block bytes are recovered by growing tl / tn below.
    if tc == C and C % (2 * c_align) == 0:
        tc = C // 2

    # lane tile: largest 128-multiple divisor of L within the byte budget
    max_tl = max(128, _TARGET_BLOCK_BYTES // max(1, tc * itemsize))
    tl = _largest_aligned_divisor(L, 128, max_tl)
    if tl is None:
        # TODO(synk): mask/pad the ragged lane edge instead of a full-dim fallback.
        tl = L

    # batch tile: when L (hence tl) is small, grow the block toward the budget via N
    blk = max(1, tc * tl * itemsize)
    max_tn = min(N, max(1, _TARGET_BLOCK_BYTES // blk))
    tn = 1
    for cand in range(max_tn, 0, -1):
        if N % cand == 0:
            tn = cand
            break
    return tn, tc, tl


# ----------------------------------------------------------------------------- stats pass

def _make_stats_kernel(lane_chunks):
    """lane_chunks = tl // 128 when 128 | tl (lane-shaped VPU-only accumulation),
    otherwise None (tl < 128 or ragged full-dim: accumulator width = tl)."""

    def kernel(x_ref, sum_ref, sumsq_ref):
        n = pl.program_id(1)
        l = pl.program_id(2)

        @pl.when(jnp.logical_and(n == 0, l == 0))
        def _():
            sum_ref[...] = jnp.zeros_like(sum_ref)
            sumsq_ref[...] = jnp.zeros_like(sumsq_ref)

        x = x_ref[...].astype(jnp.float32)                     # (tn, tc, tl)
        if lane_chunks is not None:
            tn, tc, _ = x.shape
            xr = x.reshape(tn, tc, lane_chunks, 128)
            # reductions over non-lane axes only -> plain vreg adds (no XLU),
            # and the resident accumulator store stays lane-dense (tc, 128).
            sum_ref[...] += jnp.sum(xr, axis=(0, 2))
            sumsq_ref[...] += jnp.sum(xr * xr, axis=(0, 2))
        else:
            sum_ref[...] += jnp.sum(x, axis=0)                 # (tc, tl)
            sumsq_ref[...] += jnp.sum(x * x, axis=0)

    return kernel


def _compute_stats(x, tn, tc, tl):
    """Per-channel sum and sum-of-squares over (N, L), f32, via lane-partial accumulators."""
    N, C, L = x.shape
    lane_chunks = tl // 128 if (tl >= 128 and tl % 128 == 0) else None
    W = 128 if lane_chunks is not None else tl
    grid = (C // tc, N // tn, L // tl)
    x_bytes = int(x.size) * x.dtype.itemsize

    s, sq = pl.pallas_call(
        _make_stats_kernel(lane_chunks),
        out_shape=(jax.ShapeDtypeStruct((C, W), jnp.float32),
                   jax.ShapeDtypeStruct((C, W), jnp.float32)),
        grid=grid,
        in_specs=[pl.BlockSpec((tn, tc, tl), lambda c, n, l: (n, c, l))],
        out_specs=(pl.BlockSpec((tc, W), lambda c, n, l: (c, 0)),
                   pl.BlockSpec((tc, W), lambda c, n, l: (c, 0))),
        compiler_params=pltpu.CompilerParams(
            dimension_semantics=("parallel", "arbitrary", "arbitrary")),
        cost_estimate=pl.CostEstimate(
            flops=3 * int(x.size), transcendentals=0,
            bytes_accessed=x_bytes + 2 * C * W * 4),
    )(x)
    # collapse lane partials in the tiny C-length glue
    return jnp.sum(s, axis=1), jnp.sum(sq, axis=1)


# ----------------------------------------------------------------------------- apply pass

def _bn_apply_kernel(x_ref, alpha_ref, beta_ref, y_ref):
    x = x_ref[...].astype(jnp.float32)                         # (tn, tc, tl)
    a = alpha_ref[...][None, :, :]                             # (1, tc, 1)
    b = beta_ref[...][None, :, :]
    y_ref[...] = (x * a + b).astype(y_ref.dtype)


def _apply_affine(x, alpha, beta, tn, tc, tl):
    N, C, L = x.shape
    grid = (C // tc, N // tn, L // tl)
    a2 = alpha.reshape(C, 1).astype(jnp.float32)
    b2 = beta.reshape(C, 1).astype(jnp.float32)
    x_bytes = int(x.size) * x.dtype.itemsize
    return pl.pallas_call(
        _bn_apply_kernel,
        out_shape=jax.ShapeDtypeStruct((N, C, L), x.dtype),
        grid=grid,
        in_specs=[pl.BlockSpec((tn, tc, tl), lambda c, n, l: (n, c, l)),
                  pl.BlockSpec((tc, 1), lambda c, n, l: (c, 0)),
                  pl.BlockSpec((tc, 1), lambda c, n, l: (c, 0))],
        out_specs=pl.BlockSpec((tn, tc, tl), lambda c, n, l: (n, c, l)),
        compiler_params=pltpu.CompilerParams(
            dimension_semantics=("parallel", "parallel", "parallel")),
        cost_estimate=pl.CostEstimate(
            flops=2 * int(x.size), transcendentals=0,
            bytes_accessed=2 * x_bytes),
    )(x, a2, b2)


# ----------------------------------------------------------------------------- fused (small x)

def _make_fused_kernel(eps, count):
    def kernel(x_ref, w_ref, b_ref, y_ref, mean_ref, var_ref):
        x = x_ref[...].astype(jnp.float32)                      # (N, C, L), VMEM-resident
        s = jnp.sum(x, axis=(0, 2), keepdims=True)              # (1, C, 1)
        sq = jnp.sum(x * x, axis=(0, 2), keepdims=True)
        mean = s[0] / count                                     # (C, 1)
        var = jnp.maximum(sq[0] / count - mean * mean, 0.0)     # biased (correction=0)
        inv = jax.lax.rsqrt(var + eps)
        alpha = w_ref[...] * inv                                # (C, 1)
        beta = b_ref[...] - mean * alpha
        y_ref[...] = (x * alpha[None, :, :] + beta[None, :, :]).astype(y_ref.dtype)
        mean_ref[...] = mean
        var_ref[...] = var
    return kernel


def _fused_train(x, weight, bias, eps):
    """Single-pass training path: stats + fused params + normalize in one VMEM sweep."""
    N, C, L = x.shape
    w2 = weight.reshape(C, 1).astype(jnp.float32)
    b2 = bias.reshape(C, 1).astype(jnp.float32)
    x_bytes = int(x.size) * x.dtype.itemsize
    y, mean, var = pl.pallas_call(
        _make_fused_kernel(eps, float(N * L)),
        out_shape=(jax.ShapeDtypeStruct((N, C, L), x.dtype),
                   jax.ShapeDtypeStruct((C, 1), jnp.float32),
                   jax.ShapeDtypeStruct((C, 1), jnp.float32)),
        grid=(1,),
        in_specs=[pl.BlockSpec((N, C, L), lambda i: (0, 0, 0)),
                  pl.BlockSpec((C, 1), lambda i: (0, 0)),
                  pl.BlockSpec((C, 1), lambda i: (0, 0))],
        out_specs=(pl.BlockSpec((N, C, L), lambda i: (0, 0, 0)),
                   pl.BlockSpec((C, 1), lambda i: (0, 0)),
                   pl.BlockSpec((C, 1), lambda i: (0, 0))),
        compiler_params=pltpu.CompilerParams(vmem_limit_bytes=32 * 1024 * 1024),
        cost_estimate=pl.CostEstimate(
            flops=5 * int(x.size), transcendentals=0, bytes_accessed=2 * x_bytes),
    )(x, w2, b2)
    return y, mean.reshape(C), var.reshape(C)


# ----------------------------------------------------------------------------- forward

def custom_batchnorm_forward(x, weight, bias, running_mean, running_var,
                             num_batches_tracked, *, training=True,
                             eps=EPS, momentum=MOMENTUM, allow_fused=True):
    """Forward of CustomBatchNorm (affine=True, track_running_stats=True,
    use_fused_params=True) on (N, C, L) input.
    Returns (y, new_running_mean, new_running_var, new_num_batches_tracked)."""
    N, C, L = x.shape
    itemsize = x.dtype.itemsize
    tn, tc, tl = _pick_tiles(N, C, L, itemsize)

    if training:
        if allow_fused and N * C * L * 4 <= _FUSED_MAX_F32_BYTES:
            y, mean, var = _fused_train(x, weight, bias, eps)
        else:
            s, sq = _compute_stats(x, tn, tc, tl)
            count = N * L
            mean = s / count
            var = jnp.maximum(sq / count - mean * mean, 0.0)   # biased (correction=0)
            # TODO(synk): for inputs with |mean| >> std use a shifted accumulation;
            # E[x^2]-mean^2 in f32 is cancellation-prone.
            inv = jax.lax.rsqrt(var + eps)
            alpha = weight.astype(jnp.float32) * inv
            beta = bias.astype(jnp.float32) - mean * alpha
            y = _apply_affine(x, alpha, beta, tn, tc, tl)
        # EMA update with the *biased* variance, as in the module's update_running_stats.
        new_rm = (1.0 - momentum) * running_mean + momentum * mean
        new_rv = (1.0 - momentum) * running_var + momentum * var
        new_nbt = num_batches_tracked + 1
        return y, new_rm, new_rv, new_nbt

    # eval: normalize with running stats, no stat update
    mean = running_mean.astype(jnp.float32)
    var = running_var.astype(jnp.float32)
    inv = jax.lax.rsqrt(var + eps)
    alpha = weight.astype(jnp.float32) * inv
    beta = bias.astype(jnp.float32) - mean * alpha
    y = _apply_affine(x, alpha, beta, tn, tc, tl)
    return y, running_mean, running_var, num_batches_tracked


# ----------------------------------------------------------------------------- test

if __name__ == "__main__":
    key = jax.random.PRNGKey(0)

    def ref_train(x, w, b, rm, rv, eps=EPS, momentum=MOMENTUM):
        mean = jnp.mean(x, axis=(0, 2))
        var = jnp.mean((x - mean[None, :, None]) ** 2, axis=(0, 2))
        sigma = jnp.sqrt(var + eps)
        alpha = w / sigma
        beta = b - w * mean / sigma
        y = x * alpha[None, :, None] + beta[None, :, None]
        return (y, (1.0 - momentum) * rm + momentum * mean,
                (1.0 - momentum) * rv + momentum * var)

    # --- small shape (BatchNorm1d input (N, C, L)): exercises the fused single-pass path
    N, C, L = 4, 8, 32
    k1, k2 = jax.random.split(key)
    x = jax.random.normal(k1, (N, C, L), jnp.float32) * 1.5 + 0.3
    w = jax.random.normal(k2, (C,), jnp.float32) * 0.1 + 1.0
    b = jnp.linspace(-0.5, 0.5, C).astype(jnp.float32)
    rm = jnp.zeros((C,), jnp.float32)
    rv = jnp.ones((C,), jnp.float32)
    nbt = jnp.asarray(0, jnp.int32)

    y, rm1, rv1, nbt1 = custom_batchnorm_forward(x, w, b, rm, rv, nbt, training=True)
    jax.block_until_ready((y, rm1, rv1))
    y_ref, rm_ref, rv_ref = ref_train(x, w, b, rm, rv)
    assert jnp.allclose(y, y_ref, atol=1e-4, rtol=1e-4), "fused train output mismatch"
    assert jnp.allclose(rm1, rm_ref, atol=1e-5), "running_mean mismatch"
    assert jnp.allclose(rv1, rv_ref, atol=1e-5), "running_var mismatch"
    assert int(nbt1) == 1

    # --- same shape, two-pass (stats + apply) kernels
    y2, rm2, rv2, _ = custom_batchnorm_forward(
        x, w, b, rm, rv, nbt, training=True, allow_fused=False)
    jax.block_until_ready(y2)
    assert jnp.allclose(y2, y_ref, atol=1e-4, rtol=1e-4), "two-pass train output mismatch"
    assert jnp.allclose(rm2, rm_ref, atol=1e-5)
    assert jnp.allclose(rv2, rv_ref, atol=1e-5)

    # --- lane-chunked stats path (L multiple of 128), still small
    N2, C2, L2 = 2, 16, 256
    k3, _ = jax.random.split(k2)
    x2 = jax.random.normal(k3, (N2, C2, L2), jnp.float32)
    w2 = jnp.ones((C2,), jnp.float32)
    b2 = jnp.zeros((C2,), jnp.float32)
    y3, rm3, rv3, _ = custom_batchnorm_forward(
        x2, w2, b2, jnp.zeros((C2,), jnp.float32), jnp.ones((C2,), jnp.float32),
        jnp.asarray(0, jnp.int32), training=True, allow_fused=False)
    jax.block_until_ready(y3)
    y3_ref, rm3_ref, rv3_ref = ref_train(x2, w2, b2,
                                         jnp.zeros((C2,), jnp.float32),
                                         jnp.ones((C2,), jnp.float32))
    assert jnp.allclose(y3, y3_ref, atol=1e-4, rtol=1e-4), "lane-chunk train mismatch"
    assert jnp.allclose(rm3, rm3_ref, atol=1e-5)
    assert jnp.allclose(rv3, rv3_ref, atol=1e-5)

    # --- eval path (running stats, no update)
    y_eval, _, _, nbte = custom_batchnorm_forward(x, w, b, rm1, rv1, nbt1, training=False)
    jax.block_until_ready(y_eval)
    sig = jnp.sqrt(rv1 + EPS)
    a_e = w / sig
    b_e = b - w * rm1 / sig
    y_eval_ref = x * a_e[None, :, None] + b_e[None, :, None]
    assert jnp.allclose(y_eval, y_eval_ref, atol=1e-4, rtol=1e-4), "eval output mismatch"
    assert int(nbte) == 1

    print("KERNEL_OK")
</pallas_src>

<mosaic_0001>
module attributes {stable_mosaic.version = 11 : i64} {
  func.func @kernel(%arg0: i32, %arg1: memref<4x8x32xf32, #tpu.memory_space<vmem>>, %arg2: memref<8x1xf32, #tpu.memory_space<vmem>>, %arg3: memref<8x1xf32, #tpu.memory_space<vmem>>, %arg4: memref<4x8x32xf32, #tpu.memory_space<vmem>>, %arg5: memref<8x1xf32, #tpu.memory_space<vmem>>, %arg6: memref<8x1xf32, #tpu.memory_space<vmem>>) attributes {dimension_semantics = [#tpu.dimension_semantics<arbitrary>], iteration_bounds = array<i64: 1>, scalar_prefetch = 0 : i64, scratch_operands = 0 : i64, tpu.core_type = #tpu.core_type<tc>, window_params = [{pipeline_mode = #tpu.pipeline_mode<synchronous>, transform_indices = @transform_0, window_bounds = array<i64: 4, 8, 32>}, {pipeline_mode = #tpu.pipeline_mode<synchronous>, transform_indices = @transform_1, window_bounds = array<i64: 8, 1>}, {pipeline_mode = #tpu.pipeline_mode<synchronous>, transform_indices = @transform_2, window_bounds = array<i64: 8, 1>}, {pipeline_mode = #tpu.pipeline_mode<synchronous>, transform_indices = @transform_3, window_bounds = array<i64: 4, 8, 32>}, {pipeline_mode = #tpu.pipeline_mode<synchronous>, transform_indices = @transform_4, window_bounds = array<i64: 8, 1>}, {pipeline_mode = #tpu.pipeline_mode<synchronous>, transform_indices = @transform_5, window_bounds = array<i64: 8, 1>}]} {
    %c0 = arith.constant 0 : index
    %c0_0 = arith.constant 0 : index
    %c0_1 = arith.constant 0 : index
    %0 = vector.load %arg1[%c0, %c0_0, %c0_1] : memref<4x8x32xf32, #tpu.memory_space<vmem>>, vector<4x8x32xf32>
    %cst = arith.constant dense<0.000000e+00> : vector<8xf32>
    %1 = vector.multi_reduction <add>, %0, %cst [0, 2] : vector<4x8x32xf32> to vector<8xf32>
    %2 = vector.shape_cast %1 : vector<8xf32> to vector<1x8x1xf32>
    %3 = arith.mulf %0, %0 : vector<4x8x32xf32>
    %cst_2 = arith.constant dense<0.000000e+00> : vector<8xf32>
    %4 = vector.multi_reduction <add>, %3, %cst_2 [0, 2] : vector<4x8x32xf32> to vector<8xf32>
    %5 = vector.shape_cast %4 : vector<8xf32> to vector<1x8x1xf32>
    %6 = vector.shape_cast %2 : vector<1x8x1xf32> to vector<8x1xf32>
    %cst_3 = arith.constant 1.280000e+02 : f32
    %7 = vector.broadcast %cst_3 : f32 to vector<8x1xf32>
    %8 = arith.divf %6, %7 : vector<8x1xf32>
    %9 = vector.shape_cast %5 : vector<1x8x1xf32> to vector<8x1xf32>
    %cst_4 = arith.constant 1.280000e+02 : f32
    %10 = vector.broadcast %cst_4 : f32 to vector<8x1xf32>
    %11 = arith.divf %9, %10 : vector<8x1xf32>
    %12 = arith.mulf %8, %8 : vector<8x1xf32>
    %13 = arith.subf %11, %12 : vector<8x1xf32>
    %cst_5 = arith.constant 0.000000e+00 : f32
    %14 = vector.broadcast %cst_5 : f32 to vector<8x1xf32>
    %15 = arith.maximumf %13, %14 : vector<8x1xf32>
    %cst_6 = arith.constant 9.99999974E-6 : f32
    %16 = vector.broadcast %cst_6 : f32 to vector<8x1xf32>
    %17 = arith.addf %15, %16 : vector<8x1xf32>
    %18 = math.rsqrt %17 : vector<8x1xf32>
    %c0_7 = arith.constant 0 : index
    %c0_8 = arith.constant 0 : index
    %19 = vector.load %arg2[%c0_7, %c0_8] : memref<8x1xf32, #tpu.memory_space<vmem>>, vector<8x1xf32>
    %20 = arith.mulf %19, %18 : vector<8x1xf32>
    %c0_9 = arith.constant 0 : index
    %c0_10 = arith.constant 0 : index
    %21 = vector.load %arg3[%c0_9, %c0_10] : memref<8x1xf32, #tpu.memory_space<vmem>>, vector<8x1xf32>
    %22 = arith.mulf %8, %20 : vector<8x1xf32>
    %23 = arith.subf %21, %22 : vector<8x1xf32>
    %24 = vector.shape_cast %20 : vector<8x1xf32> to vector<1x8x1xf32>
    %25 = vector.broadcast %24 : vector<1x8x1xf32> to vector<4x8x32xf32>
    %26 = arith.mulf %0, %25 : vector<4x8x32xf32>
    %27 = vector.shape_cast %23 : vector<8x1xf32> to vector<1x8x1xf32>
    %28 = vector.broadcast %27 : vector<1x8x1xf32> to vector<4x8x32xf32>
    %29 = arith.addf %26, %28 : vector<4x8x32xf32>
    %c0_11 = arith.constant 0 : index
    %c0_12 = arith.constant 0 : index
    %c0_13 = arith.constant 0 : index
    %30 = vector.load %arg4[%c0_11, %c0_12, %c0_13] : memref<4x8x32xf32, #tpu.memory_space<vmem>>, vector<4x8x32xf32>
    tpu.vector_store %arg4[%c0_11, %c0_12, %c0_13], %29 {strides = array<i32>} : memref<4x8x32xf32, #tpu.memory_space<vmem>>, vector<4x8x32xf32>,
    %c0_14 = arith.constant 0 : index
    %c0_15 = arith.constant 0 : index
    %31 = vector.load %arg5[%c0_14, %c0_15] : memref<8x1xf32, #tpu.memory_space<vmem>>, vector<8x1xf32>
    tpu.vector_store %arg5[%c0_14, %c0_15], %8 {strides = array<i32>} : memref<8x1xf32, #tpu.memory_space<vmem>>, vector<8x1xf32>,
    %c0_16 = arith.constant 0 : index
    %c0_17 = arith.constant 0 : index
    %32 = vector.load %arg6[%c0_16, %c0_17] : memref<8x1xf32, #tpu.memory_space<vmem>>, vector<8x1xf32>
    tpu.vector_store %arg6[%c0_16, %c0_17], %15 {strides = array<i32>} : memref<8x1xf32, #tpu.memory_space<vmem>>, vector<8x1xf32>,
    return
  }
  func.func @transform_0(%arg0: i32) -> (i32, i32, i32) {
    %c0_i32 = arith.constant 0 : i32
    %c0_i32_0 = arith.constant 0 : i32
    %c0_i32_1 = arith.constant 0 : i32
    %c0_i32_2 = arith.constant 0 : i32
    return %c0_i32, %c0_i32_0, %c0_i32_1 : i32, i32, i32
  }
  func.func @transform_1(%arg0: i32) -> (i32, i32) {
    %c0_i32 = arith.constant 0 : i32
    %c0_i32_0 = arith.constant 0 : i32
    %c0_i32_1 = arith.constant 0 : i32
    return %c0_i32, %c0_i32_0 : i32, i32
  }
  func.func @transform_2(%arg0: i32) -> (i32, i32) {
    %c0_i32 = arith.constant 0 : i32
    %c0_i32_0 = arith.constant 0 : i32
    %c0_i32_1 = arith.constant 0 : i32
    return %c0_i32, %c0_i32_0 : i32, i32
  }
  func.func @transform_3(%arg0: i32) -> (i32, i32, i32) {
    %c0_i32 = arith.constant 0 : i32
    %c0_i32_0 = arith.constant 0 : i32
    %c0_i32_1 = arith.constant 0 : i32
    %c0_i32_2 = arith.constant 0 : i32
    return %c0_i32, %c0_i32_0, %c0_i32_1 : i32, i32, i32
  }
  func.func @transform_4(%arg0: i32) -> (i32, i32) {
    %c0_i32 = arith.constant 0 : i32
    %c0_i32_0 = arith.constant 0 : i32
    %c0_i32_1 = arith.constant 0 : i32
    return %c0_i32, %c0_i32_0 : i32, i32
  }
  func.func @transform_5(%arg0: i32) -> (i32, i32) {
    %c0_i32 = arith.constant 0 : i32
    %c0_i32_0 = arith.constant 0 : i32
    %c0_i32_1 = arith.constant 0 : i32
    return %c0_i32, %c0_i32_0 : i32, i32
  }
}

</mosaic_0001>

<bundles_post_ra>
// kernel: tpu_custom_call.1
= control target key start
LH: loop header
LB: loop body
LE: loop exit
PB: predicated region body
PF: predicated region fallthrough
CT: control target
= control target key end

     0   :  { %11 = vsyncpa [#allocation3], 0  ;;  %s268_s0 = inlined_call_operand.hbm [shape: f32[4,8,32], index: 0, kind: input, shape index: {}]   ;;  %s269_s1 = inlined_call_operand.vmem [shape: f32[8,1], index: 1, kind: input, shape index: {}]   ;;  %s270_s2 = inlined_call_operand.vmem [shape: f32[8,1], index: 2, kind: input, shape index: {}]   ;;  %s271_s3 = inlined_call_operand.hbm [shape: f32[4,8,32], index: 3, kind: output, shape index: {0}]   ;;  %s272_s4 = inlined_call_operand.vmem [shape: f32[8,1], index: 4, kind: output, shape index: {1}]   ;;  %s273_s5 = inlined_call_operand.vmem [shape: f32[8,1], index: 5, kind: output, shape index: {2}]  }
   0x1   :  { %12 = vsyncpa [#allocation4], 0  ;;  %s179_s18 = smov [#allocation2]   ;;  %s131_s22 = scalar_lea.hbm %s268_s0, 512 }
   0x2   :  { %s18_s19 = sshll.u32 %s179_s18, 4  ;;  %p132_p0 = scmp.ne.s32.totalorder %s268_s0, %s131_s22  ;;  %s19_s19 = int_to_ptr.vmem [resolvable:$true] %s18_s19 }
   0x3   :  { %p135_p1 = scmp.lt.u32.totalorder %s131_s22, %s268_s0 }
   0x5   :  { %p137_p2 = pnand %p135_p1, %p132_p0 }
   0x7   :  { %140 = shalt.err (!%p137_p2)
}
   0x8   :  { %s141_s27 = scalar_lea.vmem %s19_s19, 512  ;;  %p146_p4 = scmp.lt.s32.totalorder %s19_s19, %s19_s19 }
   0x9   :  { %p142_p3 = scmp.ne.s32.totalorder %s19_s19, %s141_s27  ;;  %p147_p5 = scmp.lt.s32.totalorder %s141_s27, %s141_s27 }
   0xb   :  { %p148_p6 = por %p147_p5, %p146_p4 }
   0xd   :  { %p149_p7 = pnand %p148_p6, %p142_p3 }
   0xf   :  { %152 = shalt.err (!%p149_p7)
}
  0x10   :  { %s180_s28 = smov 128   ;;  %s181_s29 = smov 8  }
  0x11   :  { %24 = dma.hbm_to_vmem [thread:$0]  %s268_s0, 512, %s19_s19, [#allocation3], %s180_s28, %s180_s28, %s181_s29  }
  0x12   :  { %175 = dma.done.wait [#allocation3], 512  }
  0x13   :  { %176 = vsyncadd [#allocation3], 4294966784  ;;  %vm36_vm0 = vcmask 261120   ;;  %v32_v0 = vld [vmem:[#allocation2] sm:$0xff]  ;;  %v33_v1 = vld [vmem:[#allocation2 + $0x8] sm:$0xff]  ;;  %v182_v22 = vmov 0  }
  0x14   :  { %v34_v2 = vld [vmem:[#allocation2 + $0x10] sm:$0xff]  ;;  %v35_v3 = vld [vmem:[#allocation2 + $0x18] sm:$0xff]  ;;  %v37_v4 = vsel %vm36_vm0, %v32_v0, 0.0  ;;  %v38_v5 = vsel %vm36_vm0, %v33_v1, 0.0  ;;  %v46_v7 = vmul.f32 %v32_v0, %v32_v0  ;;  %v47_v9 = vmul.f32 %v33_v1, %v33_v1  ;;  %127 = vset.pattern.permute.xlu1 %v182_v22  ;;  %128 = vset.pattern.permute.xlu0 %v182_v22  ;;  %v67_v31 = vld [vmem:[%s269_s1] sm:$0xff] }
  0x15   :  { %v40_v6 = vsel %vm36_vm0, %v34_v2, 0.0  ;;  %v39_v8 = vadd.f32 %v38_v5, %v37_v4  ;;  %v48_v10 = vmul.f32 %v34_v2, %v34_v2  ;;  %v42_v11 = vsel %vm36_vm0, %v35_v3, 0.0  ;;  %v69_v34 = vld [vmem:[%s270_s2] sm:$0xff] }
  0x16   :  { %v49_v12 = vmul.f32 %v35_v3, %v35_v3  ;;  %v50_v13 = vsel %vm36_vm0, %v46_v7, 0.0  ;;  %v51_v15 = vsel %vm36_vm0, %v47_v9, 0.0  ;;  %vm94_vm1 = vcmask 7168  }
  0x17   :  { %v41_v14 = vadd.f32 %v40_v6, %v39_v8  ;;  %v53_v16 = vsel %vm36_vm0, %v48_v10, 0.0  ;;  %v52_v17 = vadd.f32 %v51_v15, %v50_v13 }
  0x18   :  { %v55_v19 = vsel %vm36_vm0, %v49_v12, 0.0 }
  0x19   :  { %v43_v18 = vadd.f32 %v42_v11, %v41_v14  ;;  %v54_v20 = vadd.f32 %v53_v16, %v52_v17 }
  0x1b   :  { %44 = vadd.xlane.f32.xlu0 %v43_v18  ;;  %v56_v21 = vadd.f32 %v55_v19, %v54_v20 }
  0x1f   :  { %57 = vadd.xlane.f32.xlu0 %v56_v21 }
  0xa8   :  { %v45_v23 = vpop.xlane.xlu0 %44 }
  0xa9   :  { %v60_v24 = vmul.f32 0.0078125, %v45_v23 }
  0xab   :  { %95 = vst.msk [vmem:[%s272_s4] sm:$0xff] %vm94_vm1, %v60_v24  ;;  %v62_v26 = vmul.f32 %v60_v24, %v60_v24  ;;  %s183_s4 = smov [#allocation5]  }
  0xac   :  { %v58_v25 = vpop.xlane.xlu0 %57  ;;  %s102_s14 = sshll.u32 %s183_s4, 4  ;;  %s103_s14 = int_to_ptr.vmem [resolvable:$true] %s102_s14 }
  0xad   :  { %v61_v27 = vmul.f32 0.0078125, %v58_v25  ;;  %s153_s1 = scalar_lea.vmem %s103_s14, 512  ;;  %p158_p9 = scmp.lt.s32.totalorder %s103_s14, %s103_s14 }
  0xae   :  { %p154_p8 = scmp.ne.s32.totalorder %s103_s14, %s153_s1  ;;  %p159_p10 = scmp.lt.s32.totalorder %s153_s1, %s153_s1 }
  0xaf   :  { %v63_v28 = vsub.f32 %v61_v27, %v62_v26 }
  0xb0   :  { %p160_p11 = por %p159_p10, %p158_p9 }
  0xb1   :  { %v64_v29 = vmax.f32 %v63_v28, 0.0 }
  0xb2   :  { %p161_p12 = pnand %p160_p11, %p154_p8 }
  0xb3   :  { %v65_v30 = vadd.f32 1e-05, %v64_v29  ;;  %96 = vst.msk [vmem:[%s273_s5] sm:$0xff] %vm94_vm1, %v64_v29 }
  0xb5   :  { %129 = vrsqrt.f32 %v65_v30 }
  0xbf   :  { %v130_v32 = vpop.eup %129 }
  0xc0   :  { %v68_v33 = vmul.f32 %v130_v32, %v67_v31 }
  0xc2   :  { %74 = vperm.xlu1 %127, %v68_v33   ;;  %v70_v35 = vmul.f32 %v68_v33, %v60_v24 }
  0xc4   :  { %v71_v36 = vsub.f32 %v69_v34, %v70_v35 }
  0xc6   :  { %83 = vperm.xlu1 %127, %v71_v36  }
 0x141   :  { %v75_v37 = vpop.permute.xlu1 %74 }
 0x142   :  { %v77_v38 = vmul.f32 %v75_v37, %v32_v0  ;;  %v78_v39 = vmul.f32 %v75_v37, %v33_v1  ;;  %v79_v40 = vmul.f32 %v75_v37, %v34_v2  ;;  %v80_v41 = vmul.f32 %v75_v37, %v35_v3 }
 0x145   :  { %v84_v42 = vpop.permute.xlu1 %83 }
 0x146   :  { %v86_v43 = vadd.f32 %v84_v42, %v77_v38  ;;  %v87_v44 = vadd.f32 %v84_v42, %v78_v39  ;;  %v88_v45 = vadd.f32 %v84_v42, %v79_v40  ;;  %v89_v46 = vadd.f32 %v84_v42, %v80_v41 }
 0x148   :  { %90 = vst.msk [vmem:[#allocation5] sm:$0xff] %vm36_vm0, %v86_v43  ;;  %91 = vst.msk [vmem:[#allocation5 + $0x8] sm:$0xff] %vm36_vm0, %v87_v44 }
 0x149   :  { %92 = vst.msk [vmem:[#allocation5 + $0x10] sm:$0xff] %vm36_vm0, %v88_v45  ;;  %93 = vst.msk [vmem:[#allocation5 + $0x18] sm:$0xff] %vm36_vm0, %v89_v46 }
 0x14a   :  { %164 = shalt.err (!%p161_p12)
}
 0x14b   :  { %s165_s15 = scalar_lea.hbm %s271_s3, 512 }
 0x14c   :  { %p166_p13 = scmp.ne.s32.totalorder %s271_s3, %s165_s15  ;;  %p169_p0 = scmp.lt.u32.totalorder %s165_s15, %s271_s3 }
 0x14e   :  { %p171_p1 = pnand %p169_p0, %p166_p13 }
 0x150   :  { %174 = shalt.err (!%p171_p1)
}
 0x151   :  { %108 = dma.vmem_to_hbm [thread:$0]  %s103_s14, 512, %s271_s3, [#allocation4], %s180_s28, %s180_s28, %s181_s29  }
 0x152   :  { %177 = dma.done.wait [#allocation4], 512  }
 0x153   :  { %178 = vsyncadd [#allocation4], 4294966784 }
 0x154   :  { %120 = vsyncpa [#allocation3], 1 }
 0x155   :  { %121 = vsyncpa [#allocation4], 1 }

</bundles_post_ra>
